<compile_context>
chip_gen: v7x
topology: tpu7x:2x2x1
jax: 0.10.0
libtpu: 0.0.40
codegen_flags: <defaults>
</compile_context>

<pallas_src>
import functools
import math

import jax
import jax.numpy as jnp
from jax.experimental import pallas as pl
from jax.experimental.pallas import tpu as pltpu

_LANES = 128
_SUBLANES = 8
_TARGET_TILE_BYTES = 1 << 20  # ~1 MiB per buffer; x, x[index], out are each double-buffered.


def _mixup_kernel(index_ref, lam_ref, x_ref, xperm_ref, o_ref):
    """One (1, tile_rows, 128) tile of: lam * x[i] + (1 - lam) * x[index[i]].

    index_ref, lam_ref: SMEM scalar-prefetch refs (permutation, lambda); the
    permutation is consumed by the BlockSpec index_maps, not in the body.
    """
    del index_ref
    lam = lam_ref[0]
    a = x_ref[...].astype(jnp.float32)
    b = xperm_ref[...].astype(jnp.float32)
    o_ref[...] = (lam * a + (1.0 - lam) * b).astype(o_ref.dtype)


def _ceil_to(x, m):
    return -(-x // m) * m


@functools.partial(jax.jit, static_argnames=("training",))
def manifold_mixup(x, lam, index, training=True):
    """Pallas implementation of _ManifoldMixup.forward (enabled block).

    x:     (B, ...) activations (any trailing shape, e.g. NCHW), f32 or bf16
    lam:   scalar mixing coefficient (lambda_)
    index: (B,) int batch permutation
    """
    if not training:
        # Eval mode: lambda_ = 1.0, index = arange(B) -> identity. Skip the
        # full read-read-write HBM pass entirely.
        return x

    orig_shape = x.shape
    B = orig_shape[0]
    S = math.prod(orig_shape[1:])
    itemsize = jnp.dtype(x.dtype).itemsize

    # Sublane tile for this dtype: f32 -> 8, bf16 -> 16, int8/fp8 -> 32.
    sublane_mult = _SUBLANES * max(1, 4 // itemsize)

    # Lane-dense view: each batch row becomes (rows, 128).
    rows = -(-S // _LANES)
    max_tile_rows = max(
        sublane_mult,
        (_TARGET_TILE_BYTES // (_LANES * itemsize)) // sublane_mult * sublane_mult,
    )
    if rows <= max_tile_rows:
        tile_rows = _ceil_to(rows, sublane_mult)
    else:
        tile_rows = max_tile_rows
    rows_padded = _ceil_to(rows, tile_rows)
    s_padded = rows_padded * _LANES
    n_tiles = rows_padded // tile_rows

    x2 = x.reshape(B, S)
    if s_padded != S:
        x2 = jnp.pad(x2, ((0, 0), (0, s_padded - S)))
    x3 = x2.reshape(B, rows_padded, _LANES)

    lam_arr = jnp.asarray(lam, dtype=jnp.float32).reshape(1)
    index = jnp.asarray(index, dtype=jnp.int32)

    blk = (1, tile_rows, _LANES)
    grid_spec = pltpu.PrefetchScalarGridSpec(
        num_scalar_prefetch=2,  # (index, lam) land in SMEM, feed the index_maps
        grid=(B, n_tiles),
        in_specs=[
            # x row i, feature tile t
            pl.BlockSpec(blk, lambda i, t, idx, lam: (i, t, 0)),
            # x row index[i], feature tile t (data-dependent gather)
            pl.BlockSpec(blk, lambda i, t, idx, lam: (idx[i], t, 0)),
        ],
        out_specs=pl.BlockSpec(blk, lambda i, t, idx, lam: (i, t, 0)),
    )

    out3 = pl.pallas_call(
        _mixup_kernel,
        out_shape=jax.ShapeDtypeStruct((B, rows_padded, _LANES), x.dtype),
        grid_spec=grid_spec,
        compiler_params=pltpu.CompilerParams(
            # Every grid step writes a distinct output block and reads are
            # pure gathers -> no ordering requirement; "parallel" lets v7x
            # shard across both TensorCores (neutral on v5e/v6e).
            dimension_semantics=("parallel", "parallel"),
            # VMEM footprint is ~6 x tile_bytes <= ~6 MiB, well under every
            # generation's default scoped limit, so no vmem_limit_bytes needed.
        ),
    )(index, lam_arr, x3, x3)

    out2 = out3.reshape(B, s_padded)
    if s_padded != S:
        out2 = out2[:, :S]
    return out2.reshape(orig_shape)


if __name__ == "__main__":
    key = jax.random.PRNGKey(0)
    kx, kperm, kx2 = jax.random.split(key, 3)

    # Lane-aligned case (C*H*W = 1024), f32.
    B, C, H, W = 2, 4, 16, 16
    x = jax.random.normal(kx, (B, C, H, W), dtype=jnp.float32)
    index = jax.random.permutation(kperm, B).astype(jnp.int32)
    lam = jnp.float32(0.3)

    out = jax.block_until_ready(manifold_mixup(x, lam, index, training=True))
    ref = lam * x + (1.0 - lam) * x[index]
    assert out.shape == x.shape and out.dtype == x.dtype
    assert jnp.allclose(out, ref, atol=1e-6, rtol=1e-6)

    # Eval mode: identity (short-circuit, no kernel launch).
    out_eval = jax.block_until_ready(manifold_mixup(x, lam, index, training=False))
    assert jnp.allclose(out_eval, x)

    # Non-lane-aligned spatial dims + bf16 (exercises padding and dtype cast).
    B2, C2, H2, W2 = 4, 3, 7, 7
    xb = jax.random.normal(kx2, (B2, C2, H2, W2), dtype=jnp.float32).astype(jnp.bfloat16)
    idx2 = jax.random.permutation(jax.random.PRNGKey(1), B2).astype(jnp.int32)
    out_b = jax.block_until_ready(manifold_mixup(xb, lam, idx2, training=True))
    ref_b = (lam * xb.astype(jnp.float32)
             + (1.0 - lam) * xb[idx2].astype(jnp.float32)).astype(jnp.bfloat16)
    assert out_b.shape == xb.shape and out_b.dtype == jnp.bfloat16
    assert jnp.allclose(out_b.astype(jnp.float32), ref_b.astype(jnp.float32),
                        atol=1e-2, rtol=1e-2)

    print("KERNEL_OK")
</pallas_src>

<mosaic_0001>
module attributes {stable_mosaic.version = 11 : i64} {
  func.func @_mixup_kernel(%arg0: i32, %arg1: i32, %arg2: memref<2xi32, #tpu.memory_space<smem>>, %arg3: memref<1xf32, #tpu.memory_space<smem>>, %arg4: memref<1x8x128xf32, #tpu.memory_space<vmem>>, %arg5: memref<1x8x128xf32, #tpu.memory_space<vmem>>, %arg6: memref<1x8x128xf32, #tpu.memory_space<vmem>>) attributes {dimension_semantics = [#tpu.dimension_semantics<parallel>, #tpu.dimension_semantics<parallel>], iteration_bounds = array<i64: 2, 1>, scalar_prefetch = 2 : i64, scratch_operands = 0 : i64, tpu.core_type = #tpu.core_type<tc>, window_params = [{transform_indices = @transform_0, window_bounds = array<i64: 1, 8, 128>}, {transform_indices = @transform_1, window_bounds = array<i64: 1, 8, 128>}, {transform_indices = @transform_2, window_bounds = array<i64: 1, 8, 128>}]} {
    %c0 = arith.constant 0 : index
    %0 = memref.load %arg3[%c0] : memref<1xf32, #tpu.memory_space<smem>>
    %c0_0 = arith.constant 0 : index
    %c0_1 = arith.constant 0 : index
    %c0_2 = arith.constant 0 : index
    %1 = vector.load %arg4[%c0_0, %c0_1, %c0_2] : memref<1x8x128xf32, #tpu.memory_space<vmem>>, vector<1x8x128xf32>
    %c0_3 = arith.constant 0 : index
    %c0_4 = arith.constant 0 : index
    %c0_5 = arith.constant 0 : index
    %2 = vector.load %arg5[%c0_3, %c0_4, %c0_5] : memref<1x8x128xf32, #tpu.memory_space<vmem>>, vector<1x8x128xf32>
    %3 = vector.broadcast %0 : f32 to vector<1x8x128xf32>
    %4 = arith.mulf %3, %1 : vector<1x8x128xf32>
    %cst = arith.constant 1.000000e+00 : f32
    %5 = arith.subf %cst, %0 : f32
    %6 = vector.broadcast %5 : f32 to vector<1x8x128xf32>
    %7 = arith.mulf %6, %2 : vector<1x8x128xf32>
    %8 = arith.addf %4, %7 : vector<1x8x128xf32>
    %c0_6 = arith.constant 0 : index
    %c0_7 = arith.constant 0 : index
    %c0_8 = arith.constant 0 : index
    %9 = vector.load %arg6[%c0_6, %c0_7, %c0_8] : memref<1x8x128xf32, #tpu.memory_space<vmem>>, vector<1x8x128xf32>
    tpu.vector_store %arg6[%c0_6, %c0_7, %c0_8], %8 {strides = array<i32>} : memref<1x8x128xf32, #tpu.memory_space<vmem>>, vector<1x8x128xf32>,
    return
  }
  func.func @transform_0(%arg0: i32, %arg1: i32, %arg2: memref<2xi32, #tpu.memory_space<smem>>, %arg3: memref<1xf32, #tpu.memory_space<smem>>) -> (i32, i32, i32) {
    %c0_i32 = arith.constant 0 : i32
    %c0_i32_0 = arith.constant 0 : i32
    return %arg0, %arg1, %c0_i32 : i32, i32, i32
  }
  func.func @transform_1(%arg0: i32, %arg1: i32, %arg2: memref<2xi32, #tpu.memory_space<smem>>, %arg3: memref<1xf32, #tpu.memory_space<smem>>) -> (i32, i32, i32) {
    %0 = arith.index_cast %arg0 : i32 to index
    %1 = memref.load %arg2[%0] : memref<2xi32, #tpu.memory_space<smem>>
    %c0_i32 = arith.constant 0 : i32
    %c0_i32_0 = arith.constant 0 : i32
    return %1, %arg1, %c0_i32 : i32, i32, i32
  }
  func.func @transform_2(%arg0: i32, %arg1: i32, %arg2: memref<2xi32, #tpu.memory_space<smem>>, %arg3: memref<1xf32, #tpu.memory_space<smem>>) -> (i32, i32, i32) {
    %c0_i32 = arith.constant 0 : i32
    %c0_i32_0 = arith.constant 0 : i32
    return %arg0, %arg1, %c0_i32 : i32, i32, i32
  }
}

</mosaic_0001>

<bundles_post_ra>
// kernel: manifold_mixup.1
= control target key start
LH: loop header
LB: loop body
LE: loop exit
PB: predicated region body
PF: predicated region fallthrough
CT: control target
= control target key end

     0   :  { %s451_s0 = inlined_call_operand.vmem [shape: s32[2], index: 0, kind: input, shape index: {}]   ;;  %s452_s1 = inlined_call_operand.<no memory space> [shape: f32[1], index: 1, kind: input, shape index: {}]   ;;  %s453_s2 = inlined_call_operand.vmem [shape: f32[2,8,128], index: 2, kind: input, shape index: {}, may-alias: {2,3}]   ;;  %s454_s3 = inlined_call_operand.vmem [shape: f32[2,8,128], index: 3, kind: input, shape index: {}, may-alias: {2,3}]   ;;  %s455_s4 = inlined_call_operand.vmem [shape: f32[2,8,128], index: 4, kind: output, shape index: {}]  }
   0x1   :  { %s9_s17 = sshll.u32 %s451_s0, 4  ;;  %13 = sst [smem:[#allocation4]] %s452_s1  ;;  %s10_s17 = int_to_ptr.vmem [resolvable:$true] %s9_s17 }
   0x2   :  { %s348_s20 = scalar_lea.vmem %s10_s17, 16  ;;  %p353_p1 = scmp.lt.s32.totalorder %s10_s17, %s10_s17 }
   0x3   :  { %p349_p0 = scmp.ne.s32.totalorder %s10_s17, %s348_s20  ;;  %p354_p2 = scmp.lt.s32.totalorder %s348_s20, %s348_s20 }
   0x5   :  { %p355_p3 = por %p354_p2, %p353_p1 }
   0x7   :  { %p356_p4 = pnand %p355_p3, %p349_p0 }
   0x9   :  { %359 = shalt.err (!%p356_p4)  }
   0xa   :  { %s386_s21 = smov [#allocation3]  }
   0xb   :  { %12 = dma.vmem_to_smem %s10_s17, 16, %s386_s21, [#allocation2] }
   0xc   :  { %372 = dma.done.wait [#allocation2], 16 }
   0xd   :  { %373 = vsyncadd [#allocation2], 4294967280 }
   0xe   :  { %15 = sfence }
   0xf   :  { %s418_s22 = smov 0   ;;  %s420_s0 = smov 0  }
  0x10   :  { %s422_s23 = smov 0  }
  0x11 LB: > { %s33_s1 = sadd.s32 1, %s380_s0  ;;  %p317_p5 = scmp.ge.s32.totalorder %s384_s23, 1  ;;  %s384_s23 = sphi %s422_s23, %s21_s23   ;;  %s380_s0 = sphi %s420_s0, %s457_s0   ;;  %s376_s22 = sphi %s418_s22, %s456_s22  }
  0x12   : > { %p35_p6 = scmp.ge.s32.totalorder %s33_s1, 2  ;;  %p157_p7 = scmp.lt.s32.totalorder %s384_s23, 3 }
  0x14   : > { %s459_s1 = smov (%p35_p6, %s33_s1), 0  ;;  %p158_p8 = pnand %p317_p5, %p157_p7 }
  0x15   : > { %p191_p9 = scmp.lt.s32.totalorder (!%p158_p8), %s376_s22, 1  ;;  %s198_s24 = sld [smem:[#allocation3 + %s376_s22]] (!%p158_p8) }
  0x16   : > { %161 = sbr.rel (%p158_p8) target bundleno = 39 (0x27), region = 28  ;;  %s214_s25 = sld [smem:[#allocation4]] (!%p158_p8) }
  0x1b   : > { %p199_p10 = scmp.lt.s32.totalorder (!%p158_p8), %s198_s24, 1 }
  0x1c   : > { %s219_s30 = ssub.f32 (!%p158_p8), 1.0, %s214_s25  ;;  %v217_v1 = vstv (!%p158_p8), %s214_s25 }
  0x1d   : > { %s461_s22 = smov (!%p191_p9, %s376_s22), 1  ;;  %s463_s24 = smov (!%p199_p10, %s198_s24), 1 }
  0x1e   : > { %s318_s26 = sshll.u32 %s461_s22, 3  ;;  %s319_s5 = sshll.u32 %s463_s24, 3  ;;  %v220_v2 = vstv %s219_s30 }
  0x1f   : > { %s197_s29 = scalar_lea.vmem %s453_s2, %s318_s26  ;;  %s205_s8 = scalar_lea.vmem %s454_s3, %s319_s5 }
  0x20   : > { %v215_v0 = vld [vmem:[%s197_s29] sm:$0xff]  ;;  %s213_s11 = scalar_lea.vmem %s455_s4, %s318_s26 }
  0x21   : > { %v218_v3 = vmul.f32 %v217_v1, %v215_v0  ;;  %v216_v4 = vld [vmem:[%s205_s8] sm:$0xff] }
  0x22   : > { %v221_v5 = vmul.f32 %v220_v2, %v216_v4 }
  0x24   : > { %v222_v6 = vadd.f32 %v221_v5, %v218_v3 }
  0x26   : > { %223 = vst [vmem:[%s213_s11] sm:$0xff] %v222_v6 }
  0x27 PF: > { %s21_s23 = sadd.s32 1, %s384_s23   ;;  %s456_s22 = smov %s380_s0 }
  0x28   : > { %p18_p11 = scmp.ge.s32.totalorder %s21_s23, 4   ;;  %s457_s0 = smov %s459_s1 }
  0x2a   :  { %20 = sbr.rel (!%p18_p11) target bundleno = 17 (0x11), region = 61 }

</bundles_post_ra>
